<compile_context>
chip_gen: v7x
topology: tpu7x:2x2x1
jax: 0.10.0
libtpu: 0.0.40
codegen_flags: <defaults>
</compile_context>

<pallas_src>
import functools

import jax
import jax.numpy as jnp
from jax.experimental import pallas as pl
from jax.experimental.pallas import tpu as pltpu

IN_F = 23
HID_F = 25
OUT_F = 2
P = 5  # logical rows packed per physical MXU row (P*IN_F=115, P*HID_F=125 <= 128)


def dnn_kernel(x_ref, w1_ref, b1_ref, w2_ref, b2_ref, o_ref):
    # fc1 (packed): [TM,115](bf16) @ [115,125](bf16) -> f32 acc, +bias, ReLU in f32
    x = x_ref[...]
    h = jnp.dot(x, w1_ref[...], preferred_element_type=jnp.float32) + b1_ref[...]
    h = jnp.maximum(h, 0.0)
    # fc2 (packed): cast to bf16 only for the MXU; accumulate / bias-add in f32
    o = jnp.dot(h.astype(jnp.bfloat16), w2_ref[...],
                preferred_element_type=jnp.float32) + b2_ref[...]
    o_ref[...] = o.astype(o_ref.dtype)


@functools.partial(jax.jit, static_argnames=("tm",))
def dnn_forward(x, w1, b1, w2, b2, *, tm=2048):
    """x: [B, 23]; w1: [25, 23]; b1: [25]; w2: [2, 25]; b2: [2] (PyTorch layout)."""
    B = x.shape[0]
    K1, N1 = P * IN_F, P * HID_F      # 115, 125
    N2 = P * OUT_F                    # 10

    # Block-diagonal packed weights ([in, out] layout), streamed/held in bf16.
    w1_t = jnp.transpose(w1).astype(jnp.float32)                  # [23, 25]
    w2_t = jnp.transpose(w2).astype(jnp.float32)                  # [25, 2]
    eye = jnp.eye(P, dtype=jnp.float32)
    w1_blk = jnp.kron(eye, w1_t).astype(jnp.bfloat16)              # [115, 125]
    w2_blk = jnp.kron(eye, w2_t).astype(jnp.bfloat16)              # [125, 10]
    b1_blk = jnp.tile(b1.astype(jnp.float32), P).reshape(1, N1)    # [1, 125] f32
    b2_blk = jnp.tile(b2.astype(jnp.float32), P).reshape(1, N2)    # [1, 10]  f32

    # Pad B to a multiple of P, then pack 5 logical rows per physical row.
    b_pad = pl.cdiv(B, P) * P
    x_p = x.astype(jnp.float32)
    if b_pad != B:
        x_p = jnp.pad(x_p, ((0, b_pad - B), (0, 0)))
    b_pack = b_pad // P
    x_pk = x_p.reshape(b_pack, K1).astype(jnp.bfloat16)            # [B/5, 115] bf16

    # Batch tile (packed rows): large to amortize ~0.35us/step, multiple of 8,
    # but split so there are >=2 grid steps when possible (v7x dual TC).
    tm_eff = min(tm, max(8, ((b_pack + 7) // 8) * 8))
    if b_pack > 8 and b_pack <= tm_eff:
        tm_eff = max(8, ((pl.cdiv(b_pack, 2) + 7) // 8) * 8)

    bp_pad = pl.cdiv(b_pack, tm_eff) * tm_eff
    if bp_pad != b_pack:
        x_pk = jnp.pad(x_pk, ((0, bp_pad - b_pack), (0, 0)))
    grid = (bp_pad // tm_eff,)

    weight_bytes = (K1 * N1 + N1 * N2) * 2 + (N1 + N2) * 4
    cost = pl.CostEstimate(
        flops=2 * bp_pad * (K1 * N1 + N1 * N2),
        bytes_accessed=bp_pad * K1 * 2 + bp_pad * N2 * 4 + weight_bytes,
        transcendentals=0,
    )

    out = pl.pallas_call(
        dnn_kernel,
        out_shape=jax.ShapeDtypeStruct((bp_pad, N2), jnp.float32),
        grid=grid,
        in_specs=[
            # x streamed per packed-batch tile (auto double-buffered).
            # TODO(synk): add pipeline_mode=pl.Buffered(3) here if a profile
            # shows exposed input DMA at step boundaries (likely only on v5e).
            pl.BlockSpec((tm_eff, K1), lambda i: (i, 0)),
            # Packed weights / biases: constant index map -> VMEM-resident.
            pl.BlockSpec((K1, N1), lambda i: (0, 0)),
            pl.BlockSpec((1, N1), lambda i: (0, 0)),
            pl.BlockSpec((N1, N2), lambda i: (0, 0)),
            pl.BlockSpec((1, N2), lambda i: (0, 0)),
        ],
        out_specs=pl.BlockSpec((tm_eff, N2), lambda i: (i, 0)),
        compiler_params=pltpu.CompilerParams(
            dimension_semantics=("parallel",),
        ),
        cost_estimate=cost,
    )(x_pk, w1_blk, b1_blk, w2_blk, b2_blk)

    # Undo packing: drop packed padding, unpack to (B_pad, 2), drop row padding.
    return out[:b_pack].reshape(b_pad, OUT_F)[:B]


def dnn_reference(x, w1, b1, w2, b2):
    h = jnp.maximum(x @ w1.T + b1, 0.0)
    return h @ w2.T + b2


if __name__ == "__main__":
    key = jax.random.PRNGKey(0)
    kx, kw1, kb1, kw2, kb2, kx2 = jax.random.split(key, 6)

    # Deterministic synthetic params (PyTorch nn.Linear shapes: [out, in]).
    w1 = jax.random.normal(kw1, (HID_F, IN_F), dtype=jnp.float32) * 0.1
    b1 = jax.random.normal(kb1, (HID_F,), dtype=jnp.float32) * 0.1
    w2 = jax.random.normal(kw2, (OUT_F, HID_F), dtype=jnp.float32) * 0.1
    b2 = jax.random.normal(kb2, (OUT_F,), dtype=jnp.float32) * 0.1

    # Small batch (single grid step, exercises B not a multiple of P).
    B = 8
    x = jax.random.normal(kx, (B, IN_F), dtype=jnp.float32)
    out = jax.block_until_ready(dnn_forward(x, w1, b1, w2, b2))
    ref = dnn_reference(x, w1, b1, w2, b2)
    assert out.shape == (B, OUT_F), out.shape
    # bf16 streaming -> relaxed tolerance vs the f32 reference.
    assert jnp.allclose(out, ref, atol=5e-2, rtol=5e-2), "mismatch vs reference"

    # Ragged batch (exercises P-padding + packed padding + 2-step parallel grid).
    B2 = 130
    x2 = jax.random.normal(kx2, (B2, IN_F), dtype=jnp.float32)
    out2 = jax.block_until_ready(dnn_forward(x2, w1, b1, w2, b2, tm=64))
    ref2 = dnn_reference(x2, w1, b1, w2, b2)
    assert out2.shape == (B2, OUT_F), out2.shape
    assert jnp.allclose(out2, ref2, atol=5e-2, rtol=5e-2), "mismatch vs reference (ragged)"

    print("KERNEL_OK")
</pallas_src>

<mosaic_0001>
module attributes {stable_mosaic.version = 11 : i64} {
  func.func @dnn_kernel(%arg0: i32, %arg1: memref<8x115xbf16, #tpu.memory_space<vmem>>, %arg2: memref<115x125xbf16, #tpu.memory_space<vmem>>, %arg3: memref<1x125xf32, #tpu.memory_space<vmem>>, %arg4: memref<125x10xbf16, #tpu.memory_space<vmem>>, %arg5: memref<1x10xf32, #tpu.memory_space<vmem>>, %arg6: memref<8x10xf32, #tpu.memory_space<vmem>>) attributes {dimension_semantics = [#tpu.dimension_semantics<parallel>], iteration_bounds = array<i64: 1>, scalar_prefetch = 0 : i64, scratch_operands = 0 : i64, tpu.core_type = #tpu.core_type<tc>, window_params = [{transform_indices = @transform_0, window_bounds = array<i64: 8, 115>}, {pipeline_mode = #tpu.pipeline_mode<synchronous>, transform_indices = @transform_1, window_bounds = array<i64: 115, 125>}, {pipeline_mode = #tpu.pipeline_mode<synchronous>, transform_indices = @transform_2, window_bounds = array<i64: 1, 125>}, {pipeline_mode = #tpu.pipeline_mode<synchronous>, transform_indices = @transform_3, window_bounds = array<i64: 125, 10>}, {pipeline_mode = #tpu.pipeline_mode<synchronous>, transform_indices = @transform_4, window_bounds = array<i64: 1, 10>}, {transform_indices = @transform_5, window_bounds = array<i64: 8, 10>}]} {
    %c0 = arith.constant 0 : index
    %c0_0 = arith.constant 0 : index
    %0 = vector.load %arg1[%c0, %c0_0] : memref<8x115xbf16, #tpu.memory_space<vmem>>, vector<8x115xbf16>
    %c0_1 = arith.constant 0 : index
    %c0_2 = arith.constant 0 : index
    %1 = vector.load %arg2[%c0_1, %c0_2] : memref<115x125xbf16, #tpu.memory_space<vmem>>, vector<115x125xbf16>
    %cst = arith.constant dense<0.000000e+00> : vector<8x125xf32>
    %2 = tpu.matmul %0, %1, %cst {dimension_numbers = #tpu.dot_dimension_numbers<[1], [0], [0], [1], [0, 0, 1, 1], [], []>} : vector<8x115xbf16>, vector<115x125xbf16>, vector<8x125xf32> -> vector<8x125xf32>
    %c0_3 = arith.constant 0 : index
    %c0_4 = arith.constant 0 : index
    %3 = vector.load %arg3[%c0_3, %c0_4] : memref<1x125xf32, #tpu.memory_space<vmem>>, vector<1x125xf32>
    %4 = vector.broadcast %3 : vector<1x125xf32> to vector<8x125xf32>
    %5 = arith.addf %2, %4 : vector<8x125xf32>
    %cst_5 = arith.constant 0.000000e+00 : f32
    %6 = vector.broadcast %cst_5 : f32 to vector<8x125xf32>
    %7 = arith.maximumf %5, %6 : vector<8x125xf32>
    %8 = arith.truncf %7 : vector<8x125xf32> to vector<8x125xbf16>
    %c0_6 = arith.constant 0 : index
    %c0_7 = arith.constant 0 : index
    %9 = vector.load %arg4[%c0_6, %c0_7] : memref<125x10xbf16, #tpu.memory_space<vmem>>, vector<125x10xbf16>
    %cst_8 = arith.constant dense<0.000000e+00> : vector<8x10xf32>
    %10 = tpu.matmul %8, %9, %cst_8 {dimension_numbers = #tpu.dot_dimension_numbers<[1], [0], [0], [1], [0, 0, 1, 1], [], []>} : vector<8x125xbf16>, vector<125x10xbf16>, vector<8x10xf32> -> vector<8x10xf32>
    %c0_9 = arith.constant 0 : index
    %c0_10 = arith.constant 0 : index
    %11 = vector.load %arg5[%c0_9, %c0_10] : memref<1x10xf32, #tpu.memory_space<vmem>>, vector<1x10xf32>
    %12 = vector.broadcast %11 : vector<1x10xf32> to vector<8x10xf32>
    %13 = arith.addf %10, %12 : vector<8x10xf32>
    %c0_11 = arith.constant 0 : index
    %c0_12 = arith.constant 0 : index
    %14 = vector.load %arg6[%c0_11, %c0_12] : memref<8x10xf32, #tpu.memory_space<vmem>>, vector<8x10xf32>
    tpu.vector_store %arg6[%c0_11, %c0_12], %13 {strides = array<i32>} : memref<8x10xf32, #tpu.memory_space<vmem>>, vector<8x10xf32>,
    return
  }
  func.func @transform_0(%arg0: i32) -> (i32, i32) {
    %c0_i32 = arith.constant 0 : i32
    %c0_i32_0 = arith.constant 0 : i32
    return %arg0, %c0_i32 : i32, i32
  }
  func.func @transform_1(%arg0: i32) -> (i32, i32) {
    %c0_i32 = arith.constant 0 : i32
    %c0_i32_0 = arith.constant 0 : i32
    %c0_i32_1 = arith.constant 0 : i32
    return %c0_i32, %c0_i32_0 : i32, i32
  }
  func.func @transform_2(%arg0: i32) -> (i32, i32) {
    %c0_i32 = arith.constant 0 : i32
    %c0_i32_0 = arith.constant 0 : i32
    %c0_i32_1 = arith.constant 0 : i32
    return %c0_i32, %c0_i32_0 : i32, i32
  }
  func.func @transform_3(%arg0: i32) -> (i32, i32) {
    %c0_i32 = arith.constant 0 : i32
    %c0_i32_0 = arith.constant 0 : i32
    %c0_i32_1 = arith.constant 0 : i32
    return %c0_i32, %c0_i32_0 : i32, i32
  }
  func.func @transform_4(%arg0: i32) -> (i32, i32) {
    %c0_i32 = arith.constant 0 : i32
    %c0_i32_0 = arith.constant 0 : i32
    %c0_i32_1 = arith.constant 0 : i32
    return %c0_i32, %c0_i32_0 : i32, i32
  }
  func.func @transform_5(%arg0: i32) -> (i32, i32) {
    %c0_i32 = arith.constant 0 : i32
    %c0_i32_0 = arith.constant 0 : i32
    return %arg0, %c0_i32 : i32, i32
  }
}

</mosaic_0001>

<bundles_post_ra>
// kernel: tile.13
= control target key start
LH: loop header
LB: loop body
LE: loop exit
PB: predicated region body
PF: predicated region fallthrough
CT: control target
= control target key end

     0   :  { %s22_s0 = inlined_call_operand.vmem [shape: f32[25], index: 0, kind: input, shape index: {}]   ;;  %s23_s1 = inlined_call_operand.vmem [shape: f32[5,25], index: 1, kind: output, shape index: {}]  }
   0x1   :  { %v4_v0 = vld [vmem:[%s22_s0] ss:$0 sm:$0xff] }
   0x2   :  { %5 = vst [vmem:[%s23_s1] sm:$0xff] %v4_v0 }

// kernel: tile.14
= control target key start
LH: loop header
LB: loop body
LE: loop exit
PB: predicated region body
PF: predicated region fallthrough
CT: control target
= control target key end

     0   :  { %s43_s10 = smov 100   ;;  %s44_s11 = smov 50   ;;  %vm3_vm0 = vcmask 203776   ;;  %vm9_vm1 = vcmask 1023776   ;;  %vm15_vm2 = vcmask 818776   ;;  %vm21_vm3 = vcmask 613776   ;;  %s75_s0 = inlined_call_operand.vmem [shape: f32[5,25], index: 0, kind: input, shape index: {}]   ;;  %s76_s1 = inlined_call_operand.vmem [shape: f32[1,125], index: 1, kind: output, shape index: {}]  }
   0x1   :  { %v35_v0 = vld [vmem:[%s75_s0 + $0x4] sm:$0x1]   ;;  %v37_v1 = vld [vmem:[%s75_s0 + $0x2] sm:$0x1]   ;;  %v36_v2 = vld [vmem:[%s75_s0 + $0x3] sm:$0x1]  }
   0x2   :  { %7 = vrot.lane.b32.xlu0 %v35_v0, %s43_s10  ;;  %19 = vrot.lane.b32.xlu1 %v37_v1, %s44_s11  ;;  %v38_v3 = vld [vmem:[%s75_s0 + $0x1] sm:$0x1]   ;;  %v2_v4 = vld [vmem:[%s75_s0] sm:$0x1]   ;;  %s45_s0 = smov 75   ;;  %s46_s18 = smov 25  }
   0x3   :  { %4 = vst.msk [vmem:[#allocation0] sm:$0x1] %vm3_vm0, %v2_v4   ;;  %vm27_vm4 = vcmask 408776  }
   0x6   :  { %13 = vrot.lane.b32.xlu0 %v36_v2, %s45_s0  ;;  %25 = vrot.lane.b32.xlu1 %v38_v3, %s46_s18 }
  0x74   :  { %v8_v5 = vpop.permute.xlu0 %7   ;;  %v20_v6 = vpop.permute.xlu1 %19  }
  0x75   :  { %10 = vst.msk [vmem:[#allocation0] sm:$0x1] %vm9_vm1, %v8_v5  }
  0x78   :  { %v14_v7 = vpop.permute.xlu0 %13   ;;  %v26_v8 = vpop.permute.xlu1 %25  }
  0x79   :  { %16 = vst.msk [vmem:[#allocation0] sm:$0x1] %vm15_vm2, %v14_v7  }
  0x7a   :  { %22 = vst.msk [vmem:[#allocation0] sm:$0x1] %vm21_vm3, %v20_v6  }
  0x7b   :  { %28 = vst.msk [vmem:[#allocation0] sm:$0x1] %vm27_vm4, %v26_v8  }
  0x82   :  { %v32_v9 = vld [vmem:[#allocation0] sm:$0x1] }
  0x83   :  { %34 = vst [vmem:[%s76_s1] sm:$0x1] %v32_v9 }

// kernel: tile.18
= control target key start
LH: loop header
LB: loop body
LE: loop exit
PB: predicated region body
PF: predicated region fallthrough
CT: control target
= control target key end

     0   :  { %s22_s0 = inlined_call_operand.vmem [shape: f32[2], index: 0, kind: input, shape index: {}]   ;;  %s23_s1 = inlined_call_operand.vmem [shape: f32[5,2], index: 1, kind: output, shape index: {}]  }
   0x1   :  { %v4_v0 = vld [vmem:[%s22_s0] ss:$0 sm:$0xff] }
   0x2   :  { %5 = vst [vmem:[%s23_s1] sm:$0xff] %v4_v0 }

// kernel: tile.19
= control target key start
LH: loop header
LB: loop body
LE: loop exit
PB: predicated region body
PF: predicated region fallthrough
CT: control target
= control target key end

     0   :  { %s43_s10 = smov 8   ;;  %s44_s11 = smov 4   ;;  %vm3_vm0 = vcmask 15360   ;;  %vm9_vm1 = vcmask 80960   ;;  %vm15_vm2 = vcmask 64560   ;;  %vm21_vm3 = vcmask 48160   ;;  %s75_s0 = inlined_call_operand.vmem [shape: f32[5,2], index: 0, kind: input, shape index: {}]   ;;  %s76_s1 = inlined_call_operand.vmem [shape: f32[1,10], index: 1, kind: output, shape index: {}]  }
   0x1   :  { %v35_v0 = vld [vmem:[%s75_s0 + $0x4] sm:$0x1]   ;;  %v37_v1 = vld [vmem:[%s75_s0 + $0x2] sm:$0x1]   ;;  %v36_v2 = vld [vmem:[%s75_s0 + $0x3] sm:$0x1]  }
   0x2   :  { %7 = vrot.lane.b32.xlu0 %v35_v0, %s43_s10  ;;  %19 = vrot.lane.b32.xlu1 %v37_v1, %s44_s11  ;;  %v38_v3 = vld [vmem:[%s75_s0 + $0x1] sm:$0x1]   ;;  %v2_v4 = vld [vmem:[%s75_s0] sm:$0x1]   ;;  %s45_s0 = smov 6   ;;  %s46_s18 = smov 2  }
   0x3   :  { %4 = vst.msk [vmem:[#allocation0] sm:$0x1] %vm3_vm0, %v2_v4   ;;  %vm27_vm4 = vcmask 31760  }
   0x6   :  { %13 = vrot.lane.b32.xlu0 %v36_v2, %s45_s0  ;;  %25 = vrot.lane.b32.xlu1 %v38_v3, %s46_s18 }
  0x74   :  { %v8_v5 = vpop.permute.xlu0 %7   ;;  %v20_v6 = vpop.permute.xlu1 %19  }
  0x75   :  { %10 = vst.msk [vmem:[#allocation0] sm:$0x1] %vm9_vm1, %v8_v5  }
  0x78   :  { %v14_v7 = vpop.permute.xlu0 %13   ;;  %v26_v8 = vpop.permute.xlu1 %25  }
  0x79   :  { %16 = vst.msk [vmem:[#allocation0] sm:$0x1] %vm15_vm2, %v14_v7  }
  0x7a   :  { %22 = vst.msk [vmem:[#allocation0] sm:$0x1] %vm21_vm3, %v20_v6  }
  0x7b   :  { %28 = vst.msk [vmem:[#allocation0] sm:$0x1] %vm27_vm4, %v26_v8  }
  0x82   :  { %v32_v9 = vld [vmem:[#allocation0] sm:$0x1] }
  0x83   :  { %34 = vst [vmem:[%s76_s1] sm:$0x1] %v32_v9 }

// kernel: dnn_forward.1
= control target key start
LH: loop header
LB: loop body
LE: loop exit
PB: predicated region body
PF: predicated region fallthrough
CT: control target
= control target key end

     0   :  { %v366_v0 = vmov 0.0   ;;  %vm367_vm0 = vmmov 0   ;;  %vm93_vm1 = vcmask 1040384   ;;  %vm94_vm2 = vcmask 1041408   ;;  %s477_s1 = inlined_call_operand.vmem [shape: bf16[115,125], index: 1, kind: input, shape index: {}]   ;;  %s478_s3 = inlined_call_operand.vmem [shape: bf16[125,10], index: 3, kind: input, shape index: {}]   ;;  %s479_s0 = inlined_call_operand.vmem [shape: bf16[8,115], index: 0, kind: input, shape index: {}]   ;;  %s480_s2 = inlined_call_operand.vmem [shape: f32[1,125], index: 2, kind: input, shape index: {}]   ;;  %s481_s4 = inlined_call_operand.vmem [shape: f32[1,10], index: 4, kind: input, shape index: {}]   ;;  %s482_s5 = inlined_call_operand.vmem [shape: f32[8,10], index: 5, kind: output, shape index: {}]  }
   0x1   :  { %307 = vmatprep.subr.bf16.mxu0 %v366_v0  ;;  %v350_v1 = vld [vmem:[%s477_s1] sm:$0xff]   ;;  %327 = vmatprep.subr.bf16.mxu1 %v366_v0  ;;  %v351_v2 = vld [vmem:[%s477_s1 + $0x8] sm:$0xff]   ;;  %v352_v3 = vld [vmem:[%s477_s1 + $0x10] sm:$0xff]   ;;  %v368_v11 = vmov 65535   ;;  %vm89_vm3 = vcmask 941056   ;;  %vm216_vm4 = vcmask 1045504  }
   0x2   :  { %308 = vmatpush3.bf16.msra.mxu0 %v350_v1  ;;  %323 = vmatprep.mubr.msk.bf16.mxu0 %vm367_vm0, %v366_v0  ;;  %v358_v4 = vld [vmem:[%s478_s3] sm:$0xff]   ;;  %v359_v5 = vld [vmem:[%s478_s3 + $0x8] sm:$0xff]   ;;  %v353_v6 = vld [vmem:[%s477_s1 + $0x18] sm:$0xff]   ;;  %v95_v12 = vsel %vm93_vm1, 4294967295, %v368_v11  ;;  %vm217_vm5 = vcmask 1046528   ;;  %v218_v22 = vsel %vm216_vm4, 4294967295, %v368_v11 }
   0x3   :  { %309 = vmatprep.subr.bf16.mxu0 %v366_v0  ;;  %343 = vmatprep.mubr.msk.bf16.mxu1 %vm367_vm0, %v366_v0  ;;  %v360_v7 = vld [vmem:[%s478_s3 + $0x10] sm:$0xff]   ;;  %v354_v8 = vld [vmem:[%s477_s1 + $0x20] sm:$0xff]   ;;  %v361_v9 = vld [vmem:[%s478_s3 + $0x18] sm:$0xff]   ;;  %v96_v16 = vsel %vm94_vm2, %v95_v12, 0  ;;  %v219_v23 = vsel %vm217_vm5, %v218_v22, 0  ;;  %vm212_vm6 = vcmask 1022976  }
   0x4   :  { %328 = vmatpush3.bf16.msra.mxu1 %v358_v4  ;;  %v355_v10 = vld [vmem:[%s477_s1 + $0x28] sm:$0xff]   ;;  %v362_v13 = vld [vmem:[%s478_s3 + $0x20] sm:$0xff]   ;;  %v356_v14 = vld [vmem:[%s477_s1 + $0x30] sm:$0xff]   ;;  %vm263_vm7 = vcmask 80896  }
   0x5   :  { %329 = vmatprep.subr.bf16.mxu1 %v366_v0  ;;  %v357_v15 = vld [vmem:[%s477_s1 + $0x38] ss:$0 sps:$4 sm:$0x33]   ;;  %v363_v17 = vld [vmem:[%s478_s3 + $0x28] sm:$0xff]   ;;  %v21_v19 = vld [vmem:[%s479_s0] sm:$0xf] }
   0x6   :  { %310 = vmatpush3.bf16.msra.mxu0 %v351_v2  ;;  %v98_v18 = vand.u32 %v357_v15, %v96_v16  ;;  %v364_v20 = vld [vmem:[%s478_s3 + $0x30] sm:$0xff]   ;;  %v365_v21 = vld [vmem:[%s478_s3 + $0x38] sm:$0x7f]   ;;  %v269_v25 = vld [vmem:[%s480_s2] ss:$0 sm:$0xff] }
   0x7   :  { %311 = vmatprep.subr.bf16.mxu0 %v366_v0  ;;  %v221_v24 = vand.u32 %v365_v21, %v219_v23  ;;  %v279_v33 = vld [vmem:[%s481_s4] ss:$0 sm:$0xff] }
   0x8   :  { %330 = vmatpush3.bf16.msra.mxu1 %v359_v5 }
   0x9   :  { %331 = vmatprep.subr.bf16.mxu1 %v366_v0 }
   0xa   :  { %312 = vmatpush3.bf16.msra.mxu0 %v352_v3 }
   0xb   :  { %313 = vmatprep.subr.bf16.mxu0 %v366_v0 }
   0xc   :  { %332 = vmatpush3.bf16.msra.mxu1 %v360_v7 }
   0xd   :  { %333 = vmatprep.subr.bf16.mxu1 %v366_v0 }
   0xe   :  { %314 = vmatpush3.bf16.msra.mxu0 %v353_v6 }
   0xf   :  { %315 = vmatprep.subr.bf16.mxu0 %v366_v0 }
  0x10   :  { %334 = vmatpush3.bf16.msra.mxu1 %v361_v9 }
  0x11   :  { %335 = vmatprep.subr.bf16.mxu1 %v366_v0 }
  0x12   :  { %316 = vmatpush3.bf16.msra.mxu0 %v354_v8 }
  0x13   :  { %317 = vmatprep.subr.bf16.mxu0 %v366_v0 }
  0x14   :  { %336 = vmatpush3.bf16.msra.mxu1 %v362_v13 }
  0x15   :  { %337 = vmatprep.subr.bf16.mxu1 %v366_v0 }
  0x16   :  { %318 = vmatpush3.bf16.msra.mxu0 %v355_v10 }
  0x17   :  { %319 = vmatprep.subr.bf16.mxu0 %v366_v0 }
  0x18   :  { %338 = vmatpush3.bf16.msra.mxu1 %v363_v17 }
  0x19   :  { %339 = vmatprep.subr.bf16.mxu1 %v366_v0 }
  0x1a   :  { %320 = vmatpush3.bf16.msra.mxu0 %v356_v14 }
  0x1b   :  { %321 = vmatprep.subr.bf16.mxu0 %v366_v0 }
  0x1c   :  { %340 = vmatpush3.bf16.msra.mxu1 %v364_v20 }
  0x1d   :  { %341 = vmatprep.subr.bf16.mxu1 %v366_v0 }
  0x1e   :  { %322 = vmatpush3.bf16.msra.mxu0 %v98_v18 }
  0x20   :  { %342 = vmatpush3.bf16.msra.mxu1 %v221_v24 }
  0x21   :  { %324 = vmatmul.mubr.msk.bf16.vlgmr.msra.gmra.mrb[0].mxu0 %vm89_vm3, %v21_v19 }
  0xf4   :  { %v134_v26 = vpop.f32.mrb[0].mxu0 }
  0xf5   :  { %v135_v27 = vadd.f32 %v269_v25, %v134_v26  ;;  %v325_v28 = vpop.f32.mrb[1].mxu0 }
  0xf6   :  { %v137_v29 = vpop.f32.mrb[2].mxu0 }
  0xf7   :  { %v140_v30 = vmax.f32 %v135_v27, 0.0  ;;  %v326_v31 = vpop.f32.mrb[3].mxu0 }
  0xf9   :  { %v141_v32 = vpack.c.bf16 %v140_v30, %v140_v30 }
  0xfb   :  { %344 = vmatmul.mubr.msk.bf16.vlgmr.msra.gmra.mrb[0].mxu1 %vm212_vm6, %v141_v32 }
 0x1ce   :  { %v257_v34 = vpop.f32.mrb[0].mxu1 }
 0x1cf   :  { %v258_v35 = vadd.f32 %v279_v33, %v257_v34  ;;  %v345_v36 = vpop.f32.mrb[1].mxu1 }
 0x1d0   :  { %v260_v37 = vpop.f32.mrb[2].mxu1 }
 0x1d1   :  { %264 = vst.msk [vmem:[%s482_s5] sm:$0xff] %vm263_vm7, %v258_v35  ;;  %v346_v38 = vpop.f32.mrb[3].mxu1 }

</bundles_post_ra>
